<compile_context>
chip_gen: v6e
topology: v6e:2x2x1
jax: 0.10.0
libtpu: 0.0.40
codegen_flags: <defaults>
</compile_context>

<pallas_src>
import numpy as np
import jax
import jax.numpy as jnp
from jax.experimental import pallas as pl
from jax.experimental.pallas import tpu as pltpu


def _silu(x):
    return x * jax.nn.sigmoid(x)


# ------------------------------------------------------------------
# Fused kernel: message MLP -> scatter-add -> eig MLP -> V diag(lam) V^T
# ------------------------------------------------------------------
def _fused_qgnn_kernel(concat_ref, recv_ref, ev_ref, vflat_ref, s_ref, l_ref, r_ref,
                       w1m_ref, b1m_ref, w2m_ref, b2m_ref,
                       w1ea_ref, w1ev_ref, w1em_ref, b1e_ref, w2e_ref, b2e_ref,
                       out_ref):
    num_nodes, lane = out_ref.shape
    num_edges = concat_ref.shape[0]
    n = ev_ref.shape[1]
    n2 = n * n

    # ---- phi_message: Linear -> SiLU -> Linear -> SiLU (bf16 MXU, f32 accum) ----
    x = concat_ref[...].astype(jnp.bfloat16)
    h = jnp.dot(x, w1m_ref[...], preferred_element_type=jnp.float32) + b1m_ref[...]
    h = _silu(h)
    m = jnp.dot(h.astype(jnp.bfloat16), w2m_ref[...],
                preferred_element_type=jnp.float32) + b2m_ref[...]
    m = _silu(m)                                              # I_ij : (E, 2n) f32

    # ---- scatter_add_(0, receiver, I_ij) as a one-hot matmul (agg stays in VMEM) ----
    recv = recv_ref[0, :]                                     # (E,) int32
    node_ids = jax.lax.broadcasted_iota(jnp.int32, (num_nodes, num_edges), 0)
    onehot = (node_ids == recv[None, :]).astype(jnp.float32)  # (N, E)
    agg = jnp.dot(onehot, m, preferred_element_type=jnp.float32)   # (N, 2n)

    # ---- eigenvector row magnitudes on the lane-dense layout: ||V[b,i,:]|| ----
    vflat = vflat_ref[...]                                    # (N, n*n) f32, row-major
    mags = jnp.sqrt(jnp.dot(vflat * vflat, s_ref[...],
                            preferred_element_type=jnp.float32))    # (N, n)

    # ---- phi_eig: split-W1 matmuls (no lane concat) -> SiLU -> Linear -> softmax ----
    he = (jnp.dot(agg.astype(jnp.bfloat16), w1ea_ref[...],
                  preferred_element_type=jnp.float32)
          + jnp.dot(ev_ref[...].astype(jnp.bfloat16), w1ev_ref[...],
                    preferred_element_type=jnp.float32)
          + jnp.dot(mags.astype(jnp.bfloat16), w1em_ref[...],
                    preferred_element_type=jnp.float32)
          + b1e_ref[...])
    he = _silu(he)
    logits = jnp.dot(he.astype(jnp.bfloat16), w2e_ref[...],
                     preferred_element_type=jnp.float32) + b2e_ref[...]
    lam = jax.nn.softmax(logits, axis=-1)                     # (N, n) f32

    # ---- spectral reconstruction V diag(lam) V^T, unrolled over k ----
    # left_k[b, i*n+j] = V[b,i,k]; right_k[b, i*n+j] = V[b,j,k] via constant 0/1
    # selection matmuls (keeps everything 2-D / lane-dense, no per-node 4x4 dots),
    # accumulation lam_k * left * right is VPU multiply-add.
    recon = jnp.zeros((num_nodes, lane), jnp.float32)
    for k in range(n):
        lk = l_ref[k * n2:(k + 1) * n2, :]
        rk = r_ref[k * n2:(k + 1) * n2, :]
        left = jnp.dot(vflat, lk, preferred_element_type=jnp.float32)   # (N, lane)
        right = jnp.dot(vflat, rk, preferred_element_type=jnp.float32)  # (N, lane)
        recon = recon + lam[:, k:k + 1] * left * right
    out_ref[...] = recon                                      # full unmasked (N, 128) store


def _recon_constants(n, lane):
    """Constant 0/1 selection matrices (built once on host)."""
    n2 = n * n
    S = np.zeros((n2, n), np.float32)          # (V*V) @ S -> row-norm^2 per node row
    L = np.zeros((n * n2, lane), np.float32)   # Vflat @ L_k -> V[b,i,k] at lane i*n+j
    R = np.zeros((n * n2, lane), np.float32)   # Vflat @ R_k -> V[b,j,k] at lane i*n+j
    for i in range(n):
        for j in range(n):
            p = i * n + j
            S[p, i] = 1.0
            for k in range(n):
                L[k * n2 + i * n + k, p] = 1.0
                R[k * n2 + j * n + k, p] = 1.0
    return jnp.asarray(S), jnp.asarray(L), jnp.asarray(R)


# ------------------------------------------------------------------
# Parameter init (deterministic, PyTorch Linear-style uniform), bf16 weights
# ------------------------------------------------------------------
def _linear_params(key, fan_in, fan_out):
    kw, kb = jax.random.split(key)
    bound = 1.0 / jnp.sqrt(jnp.float32(fan_in))
    w = jax.random.uniform(kw, (fan_in, fan_out), jnp.float32, -bound, bound)
    b = jax.random.uniform(kb, (1, fan_out), jnp.float32, -bound, bound)
    return w, b


def init_params(key, node_channels_in, message_dim,
                node_attribute_size=2, edge_attribute_size=1):
    n0 = node_channels_in[0]
    prod = int(np.prod(node_channels_in))
    s = int(np.sum(node_channels_in))
    msg_in = prod * 2 + node_attribute_size * 2 + edge_attribute_size * 2
    msg_out = n0 * 2
    eig_in = s + n0 * 2
    k = jax.random.split(key, 4)
    w1m, b1m = _linear_params(k[0], msg_in, message_dim)
    w2m, b2m = _linear_params(k[1], message_dim, msg_out)
    w1e, b1e = _linear_params(k[2], eig_in, message_dim)
    w2e, b2e = _linear_params(k[3], message_dim, n0)
    bf = jnp.bfloat16
    return dict(
        w1m=w1m.astype(bf), b1m=b1m, w2m=w2m.astype(bf), b2m=b2m,
        # phi_eig first layer split by feature group: [agg | eigvals | mags]
        w1e_agg=w1e[:msg_out].astype(bf),
        w1e_ev=w1e[msg_out:msg_out + n0].astype(bf),
        w1e_mag=w1e[msg_out + n0:].astype(bf),
        b1e=b1e, w2e=w2e.astype(bf), b2e=b2e)


# ------------------------------------------------------------------
# Forward pass (real path: use_complex=False, use_phase=False)
# ------------------------------------------------------------------
def qgnn_mixing_layer_forward(h_i, edge_index, node_params, edge_params, params):
    sender = edge_index[0]
    receiver = edge_index[1]
    E = sender.shape[0]
    N = node_params.shape[0]
    n = h_i.shape[-1]
    n2 = n * n
    LANE = max(128, -(-n2 // 128) * 128)

    # eigh hoisted above the fused kernel (it does not depend on the messages).
    eigvals, eigvecs = jnp.linalg.eigh(h_i)
    eigvals = eigvals.astype(jnp.float32)
    eigvecs_flat = eigvecs.astype(jnp.float32).reshape(N, n2)   # lane-dense V layout

    # glue: gather + flatten + concat (matches torch row-major .view semantics)
    h_flat_s = h_i[sender].reshape(E, -1)
    h_flat_r = h_i[receiver].reshape(E, -1)
    edge_params_reshaped = edge_params[edge_index].reshape(E, 2)  # == torch .view(E,-1)
    concat = jnp.concatenate(
        [h_flat_s, h_flat_r, node_params[sender], node_params[receiver],
         edge_params_reshaped], axis=1).astype(jnp.float32)
    recv2d = receiver.astype(jnp.int32).reshape(1, E)

    S, L, R = _recon_constants(n, LANE)

    Din = concat.shape[1]
    Dmid = params["w1m"].shape[1]
    Dout = params["w2m"].shape[1]

    out_flat = pl.pallas_call(
        _fused_qgnn_kernel,
        out_shape=jax.ShapeDtypeStruct((N, LANE), jnp.float32),
        grid=(1,),
        in_specs=[
            pl.BlockSpec((E, Din), lambda i: (0, 0)),           # concat
            pl.BlockSpec((1, E), lambda i: (0, 0)),             # receiver ids
            pl.BlockSpec((N, n), lambda i: (0, 0)),             # eigenvalues
            pl.BlockSpec((N, n2), lambda i: (0, 0)),            # eigenvectors (flat)
            pl.BlockSpec((n2, n), lambda i: (0, 0)),            # S (row-norm selector)
            pl.BlockSpec((n * n2, LANE), lambda i: (0, 0)),     # L selection masks
            pl.BlockSpec((n * n2, LANE), lambda i: (0, 0)),     # R selection masks
            pl.BlockSpec((Din, Dmid), lambda i: (0, 0)),        # w1m (bf16)
            pl.BlockSpec((1, Dmid), lambda i: (0, 0)),          # b1m
            pl.BlockSpec((Dmid, Dout), lambda i: (0, 0)),       # w2m (bf16)
            pl.BlockSpec((1, Dout), lambda i: (0, 0)),          # b2m
            pl.BlockSpec((Dout, Dmid), lambda i: (0, 0)),       # w1e_agg (bf16)
            pl.BlockSpec((n, Dmid), lambda i: (0, 0)),          # w1e_ev (bf16)
            pl.BlockSpec((n, Dmid), lambda i: (0, 0)),          # w1e_mag (bf16)
            pl.BlockSpec((1, Dmid), lambda i: (0, 0)),          # b1e
            pl.BlockSpec((Dmid, n), lambda i: (0, 0)),          # w2e (bf16)
            pl.BlockSpec((1, n), lambda i: (0, 0)),             # b2e
        ],
        out_specs=pl.BlockSpec((N, LANE), lambda i: (0, 0)),
        compiler_params=pltpu.CompilerParams(dimension_semantics=("arbitrary",)),
    )(concat, recv2d, eigvals, eigvecs_flat, S, L, R,
      params["w1m"], params["b1m"], params["w2m"], params["b2m"],
      params["w1e_agg"], params["w1e_ev"], params["w1e_mag"],
      params["b1e"], params["w2e"], params["b2e"])

    return out_flat[:, :n2].reshape(N, n, n)


# ------------------------------------------------------------------
# Plain-JAX reference (same mixed precision) for a sanity check
# ------------------------------------------------------------------
def _reference_forward(h_i, edge_index, node_params, edge_params, params):
    sender, receiver = edge_index[0], edge_index[1]
    E = sender.shape[0]
    N = node_params.shape[0]
    h_s = h_i[sender].reshape(E, -1)
    h_r = h_i[receiver].reshape(E, -1)
    ep = edge_params[edge_index].reshape(E, 2)
    concat = jnp.concatenate([h_s, h_r, node_params[sender], node_params[receiver], ep],
                             axis=1).astype(jnp.float32)

    def mm(x, w):
        return jnp.dot(x.astype(jnp.bfloat16), w, preferred_element_type=jnp.float32)

    h1 = _silu(mm(concat, params["w1m"]) + params["b1m"])
    m = _silu(mm(h1, params["w2m"]) + params["b2m"])
    onehot = (jnp.arange(N)[:, None] == receiver[None, :]).astype(jnp.float32)
    agg = jnp.dot(onehot, m, precision=jax.lax.Precision.HIGHEST)
    eigvals, eigvecs = jnp.linalg.eigh(h_i)
    eigvals = eigvals.astype(jnp.float32)
    eigvecs = eigvecs.astype(jnp.float32)
    mags = jnp.sqrt(jnp.sum(eigvecs * eigvecs, axis=-1))
    h2 = _silu(mm(agg, params["w1e_agg"]) + mm(eigvals, params["w1e_ev"])
               + mm(mags, params["w1e_mag"]) + params["b1e"])
    lam = jax.nn.softmax(mm(h2, params["w2e"]) + params["b2e"], axis=-1)
    scaled = eigvecs * lam[:, None, :]
    return jnp.einsum('bik,bjk->bij', scaled, eigvecs,
                      precision=jax.lax.Precision.HIGHEST)


if __name__ == "__main__":
    n = 4
    node_channels_in = (n, n)
    message_dim = 32
    num_nodes = 8
    num_edges = 16

    key = jax.random.PRNGKey(0)
    k1, k2, k3, k4, k5 = jax.random.split(key, 5)

    A = jax.random.normal(k1, (num_nodes, n, n), jnp.float32)
    h_i = 0.5 * (A + jnp.swapaxes(A, -1, -2))               # symmetric, real
    edge_index = jax.random.randint(k2, (2, num_edges), 0, num_nodes, jnp.int32)
    node_params = jax.random.normal(k3, (num_nodes, 2), jnp.float32)
    edge_params = jax.random.normal(k4, (num_edges, 1), jnp.float32)

    params = init_params(k5, node_channels_in, message_dim)

    out = qgnn_mixing_layer_forward(h_i, edge_index, node_params, edge_params, params)
    out = jax.block_until_ready(out)
    assert out.shape == (num_nodes, n, n)

    ref = jax.block_until_ready(
        _reference_forward(h_i, edge_index, node_params, edge_params, params))
    err = float(jnp.max(jnp.abs(out - ref)))
    assert err < 2e-2, f"max abs err vs reference = {err}"
    print("KERNEL_OK")
</pallas_src>

<mosaic_0001>
module attributes {stable_mosaic.version = 11 : i64} {
  func.func @_fused_qgnn_kernel(%arg0: i32, %arg1: memref<16x38xf32, #tpu.memory_space<vmem>>, %arg2: memref<1x16xi32, #tpu.memory_space<vmem>>, %arg3: memref<8x4xf32, #tpu.memory_space<vmem>>, %arg4: memref<8x16xf32, #tpu.memory_space<vmem>>, %arg5: memref<16x4xf32, #tpu.memory_space<vmem>>, %arg6: memref<64x128xf32, #tpu.memory_space<vmem>>, %arg7: memref<64x128xf32, #tpu.memory_space<vmem>>, %arg8: memref<38x32xbf16, #tpu.memory_space<vmem>>, %arg9: memref<1x32xf32, #tpu.memory_space<vmem>>, %arg10: memref<32x8xbf16, #tpu.memory_space<vmem>>, %arg11: memref<1x8xf32, #tpu.memory_space<vmem>>, %arg12: memref<8x32xbf16, #tpu.memory_space<vmem>>, %arg13: memref<4x32xbf16, #tpu.memory_space<vmem>>, %arg14: memref<4x32xbf16, #tpu.memory_space<vmem>>, %arg15: memref<1x32xf32, #tpu.memory_space<vmem>>, %arg16: memref<32x4xbf16, #tpu.memory_space<vmem>>, %arg17: memref<1x4xf32, #tpu.memory_space<vmem>>, %arg18: memref<8x128xf32, #tpu.memory_space<vmem>>) attributes {dimension_semantics = [#tpu.dimension_semantics<arbitrary>], iteration_bounds = array<i64: 1>, scalar_prefetch = 0 : i64, scratch_operands = 0 : i64, tpu.core_type = #tpu.core_type<tc>, window_params = [{pipeline_mode = #tpu.pipeline_mode<synchronous>, transform_indices = @transform_0, window_bounds = array<i64: 16, 38>}, {pipeline_mode = #tpu.pipeline_mode<synchronous>, transform_indices = @transform_1, window_bounds = array<i64: 1, 16>}, {pipeline_mode = #tpu.pipeline_mode<synchronous>, transform_indices = @transform_2, window_bounds = array<i64: 8, 4>}, {pipeline_mode = #tpu.pipeline_mode<synchronous>, transform_indices = @transform_3, window_bounds = array<i64: 8, 16>}, {pipeline_mode = #tpu.pipeline_mode<synchronous>, transform_indices = @transform_4, window_bounds = array<i64: 16, 4>}, {pipeline_mode = #tpu.pipeline_mode<synchronous>, transform_indices = @transform_5, window_bounds = array<i64: 64, 128>}, {pipeline_mode = #tpu.pipeline_mode<synchronous>, transform_indices = @transform_6, window_bounds = array<i64: 64, 128>}, {pipeline_mode = #tpu.pipeline_mode<synchronous>, transform_indices = @transform_7, window_bounds = array<i64: 38, 32>}, {pipeline_mode = #tpu.pipeline_mode<synchronous>, transform_indices = @transform_8, window_bounds = array<i64: 1, 32>}, {pipeline_mode = #tpu.pipeline_mode<synchronous>, transform_indices = @transform_9, window_bounds = array<i64: 32, 8>}, {pipeline_mode = #tpu.pipeline_mode<synchronous>, transform_indices = @transform_10, window_bounds = array<i64: 1, 8>}, {pipeline_mode = #tpu.pipeline_mode<synchronous>, transform_indices = @transform_11, window_bounds = array<i64: 8, 32>}, {pipeline_mode = #tpu.pipeline_mode<synchronous>, transform_indices = @transform_12, window_bounds = array<i64: 4, 32>}, {pipeline_mode = #tpu.pipeline_mode<synchronous>, transform_indices = @transform_13, window_bounds = array<i64: 4, 32>}, {pipeline_mode = #tpu.pipeline_mode<synchronous>, transform_indices = @transform_14, window_bounds = array<i64: 1, 32>}, {pipeline_mode = #tpu.pipeline_mode<synchronous>, transform_indices = @transform_15, window_bounds = array<i64: 32, 4>}, {pipeline_mode = #tpu.pipeline_mode<synchronous>, transform_indices = @transform_16, window_bounds = array<i64: 1, 4>}, {pipeline_mode = #tpu.pipeline_mode<synchronous>, transform_indices = @transform_17, window_bounds = array<i64: 8, 128>}]} {
    %c0 = arith.constant 0 : index
    %c0_0 = arith.constant 0 : index
    %0 = vector.load %arg1[%c0, %c0_0] : memref<16x38xf32, #tpu.memory_space<vmem>>, vector<16x38xf32>
    %1 = arith.truncf %0 : vector<16x38xf32> to vector<16x38xbf16>
    %c0_1 = arith.constant 0 : index
    %c0_2 = arith.constant 0 : index
    %2 = vector.load %arg8[%c0_1, %c0_2] : memref<38x32xbf16, #tpu.memory_space<vmem>>, vector<38x32xbf16>
    %cst = arith.constant dense<0.000000e+00> : vector<16x32xf32>
    %3 = tpu.matmul %1, %2, %cst {dimension_numbers = #tpu.dot_dimension_numbers<[1], [0], [0], [1], [0, 0, 1, 1], [], []>} : vector<16x38xbf16>, vector<38x32xbf16>, vector<16x32xf32> -> vector<16x32xf32>
    %c0_3 = arith.constant 0 : index
    %c0_4 = arith.constant 0 : index
    %4 = vector.load %arg9[%c0_3, %c0_4] : memref<1x32xf32, #tpu.memory_space<vmem>>, vector<1x32xf32>
    %5 = vector.broadcast %4 : vector<1x32xf32> to vector<16x32xf32>
    %6 = arith.addf %3, %5 : vector<16x32xf32>
    %7 = arith.negf %6 : vector<16x32xf32>
    %8 = math.exp %7 : vector<16x32xf32>
    %cst_5 = arith.constant 1.000000e+00 : f32
    %9 = vector.broadcast %cst_5 : f32 to vector<16x32xf32>
    %10 = arith.addf %9, %8 : vector<16x32xf32>
    %11 = arith.divf %9, %10 : vector<16x32xf32>
    %12 = arith.mulf %6, %11 : vector<16x32xf32>
    %13 = arith.truncf %12 : vector<16x32xf32> to vector<16x32xbf16>
    %c0_6 = arith.constant 0 : index
    %c0_7 = arith.constant 0 : index
    %14 = vector.load %arg10[%c0_6, %c0_7] : memref<32x8xbf16, #tpu.memory_space<vmem>>, vector<32x8xbf16>
    %cst_8 = arith.constant dense<0.000000e+00> : vector<16x8xf32>
    %15 = tpu.matmul %13, %14, %cst_8 {dimension_numbers = #tpu.dot_dimension_numbers<[1], [0], [0], [1], [0, 0, 1, 1], [], []>} : vector<16x32xbf16>, vector<32x8xbf16>, vector<16x8xf32> -> vector<16x8xf32>
    %c0_9 = arith.constant 0 : index
    %c0_10 = arith.constant 0 : index
    %16 = vector.load %arg11[%c0_9, %c0_10] : memref<1x8xf32, #tpu.memory_space<vmem>>, vector<1x8xf32>
    %17 = vector.broadcast %16 : vector<1x8xf32> to vector<16x8xf32>
    %18 = arith.addf %15, %17 : vector<16x8xf32>
    %19 = arith.negf %18 : vector<16x8xf32>
    %20 = math.exp %19 : vector<16x8xf32>
    %cst_11 = arith.constant 1.000000e+00 : f32
    %21 = vector.broadcast %cst_11 : f32 to vector<16x8xf32>
    %22 = arith.addf %21, %20 : vector<16x8xf32>
    %23 = arith.divf %21, %22 : vector<16x8xf32>
    %24 = arith.mulf %18, %23 : vector<16x8xf32>
    %c0_12 = arith.constant 0 : index
    %c0_13 = arith.constant 0 : index
    %25 = vector.load %arg2[%c0_12, %c0_13] : memref<1x16xi32, #tpu.memory_space<vmem>>, vector<1x16xi32>
    %26 = vector.shape_cast %25 : vector<1x16xi32> to vector<16xi32>
    %27 = tpu.iota {dimensions = array<i32: 0>} : vector<8x16xi32>
    %28 = vector.shape_cast %26 : vector<16xi32> to vector<1x16xi32>
    %29 = vector.broadcast %28 : vector<1x16xi32> to vector<8x16xi32>
    %30 = arith.cmpi eq, %27, %29 : vector<8x16xi32>
    %31 = arith.extui %30 : vector<8x16xi1> to vector<8x16xi32>
    %32 = arith.sitofp %31 : vector<8x16xi32> to vector<8x16xf32>
    %cst_14 = arith.constant dense<0.000000e+00> : vector<8x8xf32>
    %33 = tpu.matmul %32, %24, %cst_14 {dimension_numbers = #tpu.dot_dimension_numbers<[1], [0], [0], [1], [0, 0, 1, 1], [], []>} : vector<8x16xf32>, vector<16x8xf32>, vector<8x8xf32> -> vector<8x8xf32>
    %c0_15 = arith.constant 0 : index
    %c0_16 = arith.constant 0 : index
    %34 = vector.load %arg4[%c0_15, %c0_16] : memref<8x16xf32, #tpu.memory_space<vmem>>, vector<8x16xf32>
    %35 = arith.mulf %34, %34 : vector<8x16xf32>
    %c0_17 = arith.constant 0 : index
    %c0_18 = arith.constant 0 : index
    %36 = vector.load %arg5[%c0_17, %c0_18] : memref<16x4xf32, #tpu.memory_space<vmem>>, vector<16x4xf32>
    %cst_19 = arith.constant dense<0.000000e+00> : vector<8x4xf32>
    %37 = tpu.matmul %35, %36, %cst_19 {dimension_numbers = #tpu.dot_dimension_numbers<[1], [0], [0], [1], [0, 0, 1, 1], [], []>} : vector<8x16xf32>, vector<16x4xf32>, vector<8x4xf32> -> vector<8x4xf32>
    %38 = math.sqrt %37 : vector<8x4xf32>
    %39 = arith.truncf %33 : vector<8x8xf32> to vector<8x8xbf16>
    %c0_20 = arith.constant 0 : index
    %c0_21 = arith.constant 0 : index
    %40 = vector.load %arg12[%c0_20, %c0_21] : memref<8x32xbf16, #tpu.memory_space<vmem>>, vector<8x32xbf16>
    %cst_22 = arith.constant dense<0.000000e+00> : vector<8x32xf32>
    %41 = tpu.matmul %39, %40, %cst_22 {dimension_numbers = #tpu.dot_dimension_numbers<[1], [0], [0], [1], [0, 0, 1, 1], [], []>} : vector<8x8xbf16>, vector<8x32xbf16>, vector<8x32xf32> -> vector<8x32xf32>
    %c0_23 = arith.constant 0 : index
    %c0_24 = arith.constant 0 : index
    %42 = vector.load %arg3[%c0_23, %c0_24] : memref<8x4xf32, #tpu.memory_space<vmem>>, vector<8x4xf32>
    %43 = arith.truncf %42 : vector<8x4xf32> to vector<8x4xbf16>
    %c0_25 = arith.constant 0 : index
    %c0_26 = arith.constant 0 : index
    %44 = vector.load %arg13[%c0_25, %c0_26] : memref<4x32xbf16, #tpu.memory_space<vmem>>, vector<4x32xbf16>
    %cst_27 = arith.constant dense<0.000000e+00> : vector<8x32xf32>
    %45 = tpu.matmul %43, %44, %cst_27 {dimension_numbers = #tpu.dot_dimension_numbers<[1], [0], [0], [1], [0, 0, 1, 1], [], []>} : vector<8x4xbf16>, vector<4x32xbf16>, vector<8x32xf32> -> vector<8x32xf32>
    %46 = arith.addf %41, %45 : vector<8x32xf32>
    %47 = arith.truncf %38 : vector<8x4xf32> to vector<8x4xbf16>
    %c0_28 = arith.constant 0 : index
    %c0_29 = arith.constant 0 : index
    %48 = vector.load %arg14[%c0_28, %c0_29] : memref<4x32xbf16, #tpu.memory_space<vmem>>, vector<4x32xbf16>
    %cst_30 = arith.constant dense<0.000000e+00> : vector<8x32xf32>
    %49 = tpu.matmul %47, %48, %cst_30 {dimension_numbers = #tpu.dot_dimension_numbers<[1], [0], [0], [1], [0, 0, 1, 1], [], []>} : vector<8x4xbf16>, vector<4x32xbf16>, vector<8x32xf32> -> vector<8x32xf32>
    %50 = arith.addf %46, %49 : vector<8x32xf32>
    %c0_31 = arith.constant 0 : index
    %c0_32 = arith.constant 0 : index
    %51 = vector.load %arg15[%c0_31, %c0_32] : memref<1x32xf32, #tpu.memory_space<vmem>>, vector<1x32xf32>
    %52 = vector.broadcast %51 : vector<1x32xf32> to vector<8x32xf32>
    %53 = arith.addf %50, %52 : vector<8x32xf32>
    %54 = arith.negf %53 : vector<8x32xf32>
    %55 = math.exp %54 : vector<8x32xf32>
    %cst_33 = arith.constant 1.000000e+00 : f32
    %56 = vector.broadcast %cst_33 : f32 to vector<8x32xf32>
    %57 = arith.addf %56, %55 : vector<8x32xf32>
    %58 = arith.divf %56, %57 : vector<8x32xf32>
    %59 = arith.mulf %53, %58 : vector<8x32xf32>
    %60 = arith.truncf %59 : vector<8x32xf32> to vector<8x32xbf16>
    %c0_34 = arith.constant 0 : index
    %c0_35 = arith.constant 0 : index
    %61 = vector.load %arg16[%c0_34, %c0_35] : memref<32x4xbf16, #tpu.memory_space<vmem>>, vector<32x4xbf16>
    %cst_36 = arith.constant dense<0.000000e+00> : vector<8x4xf32>
    %62 = tpu.matmul %60, %61, %cst_36 {dimension_numbers = #tpu.dot_dimension_numbers<[1], [0], [0], [1], [0, 0, 1, 1], [], []>} : vector<8x32xbf16>, vector<32x4xbf16>, vector<8x4xf32> -> vector<8x4xf32>
    %c0_37 = arith.constant 0 : index
    %c0_38 = arith.constant 0 : index
    %63 = vector.load %arg17[%c0_37, %c0_38] : memref<1x4xf32, #tpu.memory_space<vmem>>, vector<1x4xf32>
    %64 = vector.broadcast %63 : vector<1x4xf32> to vector<8x4xf32>
    %65 = arith.addf %62, %64 : vector<8x4xf32>
    %cst_39 = arith.constant dense<0xFF800000> : vector<8xf32>
    %66 = vector.multi_reduction <maximumf>, %65, %cst_39 [1] : vector<8x4xf32> to vector<8xf32>
    %cst_40 = arith.constant 0xFF800000 : f32
    %67 = vector.broadcast %cst_40 : f32 to vector<8xf32>
    %68 = arith.maximumf %67, %66 : vector<8xf32>
    %69 = vector.shape_cast %68 : vector<8xf32> to vector<8x1xf32>
    %70 = vector.broadcast %69 : vector<8x1xf32> to vector<8x4xf32>
    %71 = arith.subf %65, %70 : vector<8x4xf32>
    %72 = math.exp %71 : vector<8x4xf32>
    %cst_41 = arith.constant dense<0.000000e+00> : vector<8xf32>
    %73 = vector.multi_reduction <add>, %72, %cst_41 [1] : vector<8x4xf32> to vector<8xf32>
    %74 = vector.shape_cast %73 : vector<8xf32> to vector<8x1xf32>
    %75 = vector.broadcast %74 : vector<8x1xf32> to vector<8x4xf32>
    %76 = arith.divf %72, %75 : vector<8x4xf32>
    %cst_42 = arith.constant 0.000000e+00 : f32
    %77 = vector.broadcast %cst_42 : f32 to vector<8x128xf32>
    %c0_43 = arith.constant 0 : index
    %c0_44 = arith.constant 0 : index
    %78 = vector.load %arg6[%c0_43, %c0_44] : memref<64x128xf32, #tpu.memory_space<vmem>>, vector<16x128xf32>
    %c0_45 = arith.constant 0 : index
    %c0_46 = arith.constant 0 : index
    %79 = vector.load %arg7[%c0_45, %c0_46] : memref<64x128xf32, #tpu.memory_space<vmem>>, vector<16x128xf32>
    %cst_47 = arith.constant dense<0.000000e+00> : vector<8x128xf32>
    %80 = tpu.matmul %34, %78, %cst_47 {dimension_numbers = #tpu.dot_dimension_numbers<[1], [0], [0], [1], [0, 0, 1, 1], [], []>} : vector<8x16xf32>, vector<16x128xf32>, vector<8x128xf32> -> vector<8x128xf32>
    %cst_48 = arith.constant dense<0.000000e+00> : vector<8x128xf32>
    %81 = tpu.matmul %34, %79, %cst_48 {dimension_numbers = #tpu.dot_dimension_numbers<[1], [0], [0], [1], [0, 0, 1, 1], [], []>} : vector<8x16xf32>, vector<16x128xf32>, vector<8x128xf32> -> vector<8x128xf32>
    %82 = vector.extract_strided_slice %76 {offsets = [0, 0], sizes = [8, 1], strides = [1, 1]} : vector<8x4xf32> to vector<8x1xf32>
    %83 = vector.broadcast %82 : vector<8x1xf32> to vector<8x128xf32>
    %84 = arith.mulf %83, %80 : vector<8x128xf32>
    %85 = arith.mulf %84, %81 : vector<8x128xf32>
    %86 = arith.addf %77, %85 : vector<8x128xf32>
    %c16 = arith.constant 16 : index
    %c0_49 = arith.constant 0 : index
    %87 = vector.load %arg6[%c16, %c0_49] : memref<64x128xf32, #tpu.memory_space<vmem>>, vector<16x128xf32>
    %c16_50 = arith.constant 16 : index
    %c0_51 = arith.constant 0 : index
    %88 = vector.load %arg7[%c16_50, %c0_51] : memref<64x128xf32, #tpu.memory_space<vmem>>, vector<16x128xf32>
    %cst_52 = arith.constant dense<0.000000e+00> : vector<8x128xf32>
    %89 = tpu.matmul %34, %87, %cst_52 {dimension_numbers = #tpu.dot_dimension_numbers<[1], [0], [0], [1], [0, 0, 1, 1], [], []>} : vector<8x16xf32>, vector<16x128xf32>, vector<8x128xf32> -> vector<8x128xf32>
    %cst_53 = arith.constant dense<0.000000e+00> : vector<8x128xf32>
    %90 = tpu.matmul %34, %88, %cst_53 {dimension_numbers = #tpu.dot_dimension_numbers<[1], [0], [0], [1], [0, 0, 1, 1], [], []>} : vector<8x16xf32>, vector<16x128xf32>, vector<8x128xf32> -> vector<8x128xf32>
    %91 = vector.extract_strided_slice %76 {offsets = [0, 1], sizes = [8, 1], strides = [1, 1]} : vector<8x4xf32> to vector<8x1xf32>
    %92 = vector.broadcast %91 : vector<8x1xf32> to vector<8x128xf32>
    %93 = arith.mulf %92, %89 : vector<8x128xf32>
    %94 = arith.mulf %93, %90 : vector<8x128xf32>
    %95 = arith.addf %86, %94 : vector<8x128xf32>
    %c32 = arith.constant 32 : index
    %c0_54 = arith.constant 0 : index
    %96 = vector.load %arg6[%c32, %c0_54] : memref<64x128xf32, #tpu.memory_space<vmem>>, vector<16x128xf32>
    %c32_55 = arith.constant 32 : index
    %c0_56 = arith.constant 0 : index
    %97 = vector.load %arg7[%c32_55, %c0_56] : memref<64x128xf32, #tpu.memory_space<vmem>>, vector<16x128xf32>
    %cst_57 = arith.constant dense<0.000000e+00> : vector<8x128xf32>
    %98 = tpu.matmul %34, %96, %cst_57 {dimension_numbers = #tpu.dot_dimension_numbers<[1], [0], [0], [1], [0, 0, 1, 1], [], []>} : vector<8x16xf32>, vector<16x128xf32>, vector<8x128xf32> -> vector<8x128xf32>
    %cst_58 = arith.constant dense<0.000000e+00> : vector<8x128xf32>
    %99 = tpu.matmul %34, %97, %cst_58 {dimension_numbers = #tpu.dot_dimension_numbers<[1], [0], [0], [1], [0, 0, 1, 1], [], []>} : vector<8x16xf32>, vector<16x128xf32>, vector<8x128xf32> -> vector<8x128xf32>
    %100 = vector.extract_strided_slice %76 {offsets = [0, 2], sizes = [8, 1], strides = [1, 1]} : vector<8x4xf32> to vector<8x1xf32>
    %101 = vector.broadcast %100 : vector<8x1xf32> to vector<8x128xf32>
    %102 = arith.mulf %101, %98 : vector<8x128xf32>
    %103 = arith.mulf %102, %99 : vector<8x128xf32>
    %104 = arith.addf %95, %103 : vector<8x128xf32>
    %c48 = arith.constant 48 : index
    %c0_59 = arith.constant 0 : index
    %105 = vector.load %arg6[%c48, %c0_59] : memref<64x128xf32, #tpu.memory_space<vmem>>, vector<16x128xf32>
    %c48_60 = arith.constant 48 : index
    %c0_61 = arith.constant 0 : index
    %106 = vector.load %arg7[%c48_60, %c0_61] : memref<64x128xf32, #tpu.memory_space<vmem>>, vector<16x128xf32>
    %cst_62 = arith.constant dense<0.000000e+00> : vector<8x128xf32>
    %107 = tpu.matmul %34, %105, %cst_62 {dimension_numbers = #tpu.dot_dimension_numbers<[1], [0], [0], [1], [0, 0, 1, 1], [], []>} : vector<8x16xf32>, vector<16x128xf32>, vector<8x128xf32> -> vector<8x128xf32>
    %cst_63 = arith.constant dense<0.000000e+00> : vector<8x128xf32>
    %108 = tpu.matmul %34, %106, %cst_63 {dimension_numbers = #tpu.dot_dimension_numbers<[1], [0], [0], [1], [0, 0, 1, 1], [], []>} : vector<8x16xf32>, vector<16x128xf32>, vector<8x128xf32> -> vector<8x128xf32>
    %109 = vector.extract_strided_slice %76 {offsets = [0, 3], sizes = [8, 1], strides = [1, 1]} : vector<8x4xf32> to vector<8x1xf32>
    %110 = vector.broadcast %109 : vector<8x1xf32> to vector<8x128xf32>
    %111 = arith.mulf %110, %107 : vector<8x128xf32>
    %112 = arith.mulf %111, %108 : vector<8x128xf32>
    %113 = arith.addf %104, %112 : vector<8x128xf32>
    %c0_64 = arith.constant 0 : index
    %c0_65 = arith.constant 0 : index
    %114 = vector.load %arg18[%c0_64, %c0_65] : memref<8x128xf32, #tpu.memory_space<vmem>>, vector<8x128xf32>
    tpu.vector_store %arg18[%c0_64, %c0_65], %113 {strides = array<i32>} : memref<8x128xf32, #tpu.memory_space<vmem>>, vector<8x128xf32>,
    return
  }
  func.func @transform_0(%arg0: i32) -> (i32, i32) {
    %c0_i32 = arith.constant 0 : i32
    %c0_i32_0 = arith.constant 0 : i32
    %c0_i32_1 = arith.constant 0 : i32
    return %c0_i32, %c0_i32_0 : i32, i32
  }
  func.func @transform_1(%arg0: i32) -> (i32, i32) {
    %c0_i32 = arith.constant 0 : i32
    %c0_i32_0 = arith.constant 0 : i32
    %c0_i32_1 = arith.constant 0 : i32
    return %c0_i32, %c0_i32_0 : i32, i32
  }
  func.func @transform_2(%arg0: i32) -> (i32, i32) {
    %c0_i32 = arith.constant 0 : i32
    %c0_i32_0 = arith.constant 0 : i32
    %c0_i32_1 = arith.constant 0 : i32
    return %c0_i32, %c0_i32_0 : i32, i32
  }
  func.func @transform_3(%arg0: i32) -> (i32, i32) {
    %c0_i32 = arith.constant 0 : i32
    %c0_i32_0 = arith.constant 0 : i32
    %c0_i32_1 = arith.constant 0 : i32
    return %c0_i32, %c0_i32_0 : i32, i32
  }
  func.func @transform_4(%arg0: i32) -> (i32, i32) {
    %c0_i32 = arith.constant 0 : i32
    %c0_i32_0 = arith.constant 0 : i32
    %c0_i32_1 = arith.constant 0 : i32
    return %c0_i32, %c0_i32_0 : i32, i32
  }
  func.func @transform_5(%arg0: i32) -> (i32, i32) {
    %c0_i32 = arith.constant 0 : i32
    %c0_i32_0 = arith.constant 0 : i32
    %c0_i32_1 = arith.constant 0 : i32
    return %c0_i32, %c0_i32_0 : i32, i32
  }
  func.func @transform_6(%arg0: i32) -> (i32, i32) {
    %c0_i32 = arith.constant 0 : i32
    %c0_i32_0 = arith.constant 0 : i32
    %c0_i32_1 = arith.constant 0 : i32
    return %c0_i32, %c0_i32_0 : i32, i32
  }
  func.func @transform_7(%arg0: i32) -> (i32, i32) {
    %c0_i32 = arith.constant 0 : i32
    %c0_i32_0 = arith.constant 0 : i32
    %c0_i32_1 = arith.constant 0 : i32
    return %c0_i32, %c0_i32_0 : i32, i32
  }
  func.func @transform_8(%arg0: i32) -> (i32, i32) {
    %c0_i32 = arith.constant 0 : i32
    %c0_i32_0 = arith.constant 0 : i32
    %c0_i32_1 = arith.constant 0 : i32
    return %c0_i32, %c0_i32_0 : i32, i32
  }
  func.func @transform_9(%arg0: i32) -> (i32, i32) {
    %c0_i32 = arith.constant 0 : i32
    %c0_i32_0 = arith.constant 0 : i32
    %c0_i32_1 = arith.constant 0 : i32
    return %c0_i32, %c0_i32_0 : i32, i32
  }
  func.func @transform_10(%arg0: i32) -> (i32, i32) {
    %c0_i32 = arith.constant 0 : i32
    %c0_i32_0 = arith.constant 0 : i32
    %c0_i32_1 = arith.constant 0 : i32
    return %c0_i32, %c0_i32_0 : i32, i32
  }
  func.func @transform_11(%arg0: i32) -> (i32, i32) {
    %c0_i32 = arith.constant 0 : i32
    %c0_i32_0 = arith.constant 0 : i32
    %c0_i32_1 = arith.constant 0 : i32
    return %c0_i32, %c0_i32_0 : i32, i32
  }
  func.func @transform_12(%arg0: i32) -> (i32, i32) {
    %c0_i32 = arith.constant 0 : i32
    %c0_i32_0 = arith.constant 0 : i32
    %c0_i32_1 = arith.constant 0 : i32
    return %c0_i32, %c0_i32_0 : i32, i32
  }
  func.func @transform_13(%arg0: i32) -> (i32, i32) {
    %c0_i32 = arith.constant 0 : i32
    %c0_i32_0 = arith.constant 0 : i32
    %c0_i32_1 = arith.constant 0 : i32
    return %c0_i32, %c0_i32_0 : i32, i32
  }
  func.func @transform_14(%arg0: i32) -> (i32, i32) {
    %c0_i32 = arith.constant 0 : i32
    %c0_i32_0 = arith.constant 0 : i32
    %c0_i32_1 = arith.constant 0 : i32
    return %c0_i32, %c0_i32_0 : i32, i32
  }
  func.func @transform_15(%arg0: i32) -> (i32, i32) {
    %c0_i32 = arith.constant 0 : i32
    %c0_i32_0 = arith.constant 0 : i32
    %c0_i32_1 = arith.constant 0 : i32
    return %c0_i32, %c0_i32_0 : i32, i32
  }
  func.func @transform_16(%arg0: i32) -> (i32, i32) {
    %c0_i32 = arith.constant 0 : i32
    %c0_i32_0 = arith.constant 0 : i32
    %c0_i32_1 = arith.constant 0 : i32
    return %c0_i32, %c0_i32_0 : i32, i32
  }
  func.func @transform_17(%arg0: i32) -> (i32, i32) {
    %c0_i32 = arith.constant 0 : i32
    %c0_i32_0 = arith.constant 0 : i32
    %c0_i32_1 = arith.constant 0 : i32
    return %c0_i32, %c0_i32_0 : i32, i32
  }
}

</mosaic_0001>

<bundles_post_ra>
// kernel: tpu_custom_call.1
= control target key start
LH: loop header
LB: loop body
LE: loop exit
PB: predicated region body
PF: predicated region fallthrough
CT: control target
= control target key end

     0   :  { %s1896_s0 = inlined_call_operand.vmem [shape: f32[16,38], index: 0, kind: input, shape index: {}]   ;;  %s1897_s1 = inlined_call_operand.hbm [shape: s32[1,16], index: 1, kind: input, shape index: {}]   ;;  %s1898_s2 = inlined_call_operand.vmem [shape: f32[8,4], index: 2, kind: input, shape index: {}]   ;;  %s1899_s3 = inlined_call_operand.vmem [shape: f32[8,16], index: 3, kind: input, shape index: {}]   ;;  %s1900_s4 = inlined_call_operand.vmem [shape: f32[16,4], index: 4, kind: input, shape index: {}]   ;;  %s1901_s5 = inlined_call_operand.vmem [shape: f32[64,128], index: 5, kind: input, shape index: {}]   ;;  %s1902_s6 = inlined_call_operand.hbm [shape: f32[64,128], index: 6, kind: input, shape index: {}]   ;;  %s1903_s7 = inlined_call_operand.vmem [shape: bf16[38,32], index: 7, kind: input, shape index: {}]   ;;  %s1904_s8 = inlined_call_operand.vmem [shape: f32[1,32], index: 8, kind: input, shape index: {}]   ;;  %s1905_s9 = inlined_call_operand.vmem [shape: bf16[32,8], index: 9, kind: input, shape index: {}]   ;;  %s1906_s10 = inlined_call_operand.vmem [shape: f32[1,8], index: 10, kind: input, shape index: {}]   ;;  %s1907_s11 = inlined_call_operand.vmem [shape: bf16[8,32], index: 11, kind: input, shape index: {}]   ;;  %s1908_s12 = inlined_call_operand.vmem [shape: bf16[4,32], index: 12, kind: input, shape index: {}]   ;;  %s1909_s13 = inlined_call_operand.vmem [shape: bf16[4,32], index: 13, kind: input, shape index: {}]   ;;  %s1910_s14 = inlined_call_operand.vmem [shape: f32[1,32], index: 14, kind: input, shape index: {}]   ;;  %s1911_s15 = inlined_call_operand.vmem [shape: bf16[32,4], index: 15, kind: input, shape index: {}]   ;;  %s1912_s16 = inlined_call_operand.vmem [shape: f32[1,4], index: 16, kind: input, shape index: {}]   ;;  %s1913_s17 = inlined_call_operand.hbm [shape: f32[8,128], index: 17, kind: output, shape index: {}]  }
   0x1   :  { %1915 = sst [smem:[#allocation11_spill]] %s1896_s0 }
   0x2   :  { %1916 = sst [smem:[#allocation12_spill]] %s1897_s1 }
   0x3   :  { %22 = vsyncpa [#allocation3], 0 }
   0x4   :  { %23 = vsyncpa [#allocation6], 0 }
   0x5   :  { %24 = vsyncpa [#allocation4], 0  ;;  %s1605_s24 = smov [#allocation2]   ;;  %s1606_s26 = smov [#allocation5]  }
   0x6   :  { %s33_s25 = sshll.u32 %s1605_s24, 4  ;;  %s50_s27 = sshll.u32 %s1606_s26, 4  ;;  %s34_s25 = int_to_ptr.vmem [resolvable:$true] %s33_s25  ;;  %s51_s27 = int_to_ptr.vmem [resolvable:$true] %s50_s27 }
   0x7   :  { %s1547_s28 = scalar_lea.vmem %s34_s25, 16  ;;  %s1551_s29 = scalar_lea.vmem %s34_s25, 32 }
   0x8   :  { %p1548_p0 = scmp.ne.s32.totalorder %s34_s25, %s1547_s28  ;;  %p1552_p1 = scmp.lt.s32.totalorder %s34_s25, %s34_s25 }
   0x9   :  { %p1553_p2 = scmp.lt.s32.totalorder %s1551_s29, %s1547_s28 }
   0xb   :  { %p1554_p3 = por %p1553_p2, %p1552_p1 }
   0xd   :  { %p1555_p4 = pnand %p1554_p3, %p1548_p0 }
   0xf   :  { %1558 = shalt.err (!%p1555_p4)
}
  0x10   :  { %s1917_s18 = sld [smem:[#allocation12_spill]]  ;;  %s1567_s19 = scalar_lea.vmem %s51_s27, 1024 }
  0x11   :  { %p1568_p5 = scmp.ne.s32.totalorder %s51_s27, %s1567_s19  ;;  %p1572_p6 = scmp.lt.s32.totalorder %s51_s27, %s51_s27 }
  0x12   :  { %p1573_p7 = scmp.lt.s32.totalorder %s1567_s19, %s1567_s19 }
  0x14   :  { %p1574_p8 = por %p1573_p7, %p1572_p6 }
  0x16   :  { %36 = dma.hbm_to_vmem [thread:$0]  %s1917_s18, 16, %s34_s25, [#allocation3]  }
  0x17   :  { %p1575_p9 = pnand %p1574_p8, %p1568_p5 }
  0x19   :  { %1578 = shalt.err (!%p1575_p9)
}
  0x1a   :  { %s1607_s1 = smov 128   ;;  %s1608_s20 = smov 8  }
  0x1b   :  { %56 = dma.hbm_to_vmem [thread:$0]  %s1902_s6, 1024, %s51_s27, [#allocation6], %s1607_s1, %s1607_s1, %s1608_s20  }
  0x1c   :  { %1599 = dma.done.wait [#allocation3], 16  }
  0x1d   :  { %1600 = vsyncadd [#allocation3], 4294967280 }
  0x1e   :  { %1601 = dma.done.wait [#allocation6], 1024  }
  0x1f   :  { %1602 = vsyncadd [#allocation6], 4294966272  ;;  %v1609_v0 = vmov 0.0   ;;  %vm1610_vm0 = vmmov 0   ;;  %vm118_vm1 = vcmask 1042432   ;;  %v1507_v3 = vld [vmem:[%s1903_s7 + $0x8] sm:$0xff]   ;;  %v261_v45 = vlaneseq }
  0x20   :  { %1376 = vmatprep.subr.bf16.mxu0 %v1609_v0  ;;  %1382 = vmatprep.mubr.msk.bf16.mxu0 %vm1610_vm0, %v1609_v0  ;;  %v1506_v1 = vld [vmem:[%s1903_s7 + $0x10] ss:$0 sps:$4 sm:$0x77]   ;;  %v1508_v4 = vld [vmem:[%s1903_s7] sm:$0xff]   ;;  %s1918_s0 = sld [smem:[#allocation11_spill]]  ;;  %vm114_vm2 = vcmask 310272  }
  0x21   :  { %1386 = vmatprep.subr.bf16.mxu1 %v1609_v0  ;;  %1390 = vmatprep.mubr.msk.bf16.mxu1 %vm1610_vm0, %v1609_v0  ;;  %v120_v2 = vsel %vm118_vm1, %v1506_v1, 0  ;;  %v1509_v8 = vld [vmem:[%s1905_s9 + $0x8] sm:$0xff]   ;;  %v1510_v9 = vld [vmem:[%s1905_s9] sm:$0xff]   ;;  %vm201_vm3 = vcmask 261120   ;;  %vm270_vm4 = vcmask 130048   ;;  %v262_v46 = vshrl.u32 %v261_v45, 7 }
  0x22   :  { %1377 = vmatpush3.bf16.msra.mxu0 %v120_v2  ;;  %1387 = vmatpush3.bf16.msra.mxu1 %v1509_v8  ;;  %v1296_v10 = vld [vmem:[%s1904_s8] ss:$0 sm:$0xff]  ;;  %v347_v28 = vld [vmem:[%s1900_s4 + $0x8] sm:$0xff]  ;;  %vm437_vm6 = vcmask 1041408   ;;  %vm433_vm7 = vcmask 31744   ;;  %vm485_vm10 = vcmask 1043456  }
  0x23   :  { %1378 = vmatprep.subr.bf16.mxu0 %v1609_v0  ;;  %1388 = vmatprep.subr.bf16.mxu1 %v1609_v0  ;;  %v1758_v29 = vld [vmem:[%s1899_s3] sm:$0xff]  ;;  %vm481_vm11 = vcmask 64512   ;;  %v827_v45 = vld [vmem:[%s1901_s5 + $0x18] sm:$0xff] }
  0x24   :  { %v346_v30 = vld [vmem:[%s1900_s4] sm:$0xff]  ;;  %v345_v31 = vmul.f32 %v1758_v29, %v1758_v29 }
  0x25   :  { %v1303_v32 = vld [vmem:[%s1906_s10] ss:$0 sm:$0xff] }
  0x26   :  { %1379 = vmatpush3.bf16.msra.mxu0 %v1507_v3  ;;  %v84_v5 = vld [vmem:[%s1918_s0] sm:$0xff]  ;;  %v85_v6 = vld [vmem:[%s1918_s0 + $0x8] sm:$0xff]  ;;  %1389 = vmatpush3.bf16.msra.mxu1 %v1510_v9 }
  0x27   :  { %1380 = vmatprep.subr.bf16.mxu0 %v1609_v0  ;;  %v86_v7 = vpack.c.bf16 %v85_v6, %v84_v5  ;;  %1394 = vmatprep.subr.mxu1 %v1609_v0  ;;  %v1309_v47 = vld [vmem:[#allocation2] ss:$0 sm:$0xff] }
  0x28   :  { %vm267_vm5 = vcmp.eq.s32.totalorder %v262_v46, %v1309_v47  ;;  %v432_v51 = vld [vmem:[%s1908_s12] sm:$0x3]  ;;  %v826_v46 = vld [vmem:[%s1901_s5 + $0x10] sm:$0xff] }
  0x29   :  { %v1310_v53 = vsel %vm267_vm5, 1.0, %v1609_v0  ;;  %v430_v54 = vld [vmem:[%s1898_s2] sm:$0xff]  ;;  %v439_v55 = vsel %vm437_vm6, %v432_v51, 0  ;;  %v980_v51 = vld [vmem:[#allocation5 + $0x28] sm:$0xff] }
  0x2a   :  { %1381 = vmatpush3.bf16.msra.mxu0 %v1508_v4  ;;  %v530_v56 = vld [vmem:[%s1909_s13] sm:$0x3]  ;;  %v431_v57 = vpack.c.bf16 %v430_v54, %v430_v54  ;;  %v1128_v54 = vld [vmem:[%s1901_s5 + $0x30] sm:$0xff] }
  0x2b   :  { %1401 = vmatprep.subr.mxu0 %v1609_v0  ;;  %v535_v58 = vsel %vm437_vm6, %v530_v56, 0  ;;  %v429_v4 = vld [vmem:[%s1907_s11] sm:$0xf]  ;;  %v1130_v56 = vld [vmem:[#allocation5 + $0x30] sm:$0xff] }
  0x2c   :  { %v487_v5 = vsel %vm485_vm10, %v429_v4, 0  ;;  %v829_v47 = vld [vmem:[#allocation5 + $0x18] sm:$0xff] }
  0x2d   :  { %1383 = vmatmul.mubr.msk.bf16.vlgmr.msra.gmra.mxu0 %vm114_vm2, %v86_v7 }
  0x2e   :  { %1405 = vmatprep.mubr.msk.f32.mxu0 %vm1610_vm0, %v1609_v0  ;;  %1402 = vmatpush3.msra.mxu0 %v347_v28 }
  0x2f   :  { %1403 = vmatprep.subr.mxu0 %v1609_v0 }
  0x30   :  { %1404 = vmatpush3.msra.mxu0 %v346_v30 }
  0x31   :  { %1414 = vmatprep.subr.bf16.mxu0 %v1609_v0 }
  0x35   :  { %1406 = vmatmul.mubr.msk.f32.vlgmr.msra.gmra.mxu0 %vm270_vm4, %v345_v31 }
  0x36   :  { %1416 = vmatprep.mubr.msk.bf16.mxu0 %vm1610_vm0, %v1609_v0  ;;  %1415 = vmatpush3.bf16.msra.mxu0 %v487_v5 }
  0x37   :  { %1426 = vmatprep.subr.bf16.mxu0 %v1609_v0 }
  0xed   :  { %v156_v11 = vpop.f32.mrf.mxu0 }
  0xee   :  { %v157_v12 = vadd.f32 %v1296_v10, %v156_v11 }
  0xef   :  { %v1384_v13 = vpop.f32.mrf.mxu0 }
  0xf0   :  { %v1301_v14 = vmul.f32 -1.442695, %v157_v12 }
  0xf1   :  { %v159_v15 = vpop.f32.mrf.mxu0 }
  0xf2   :  { %1513 = vpow2.f32 %v1301_v14  ;;  %v160_v16 = vadd.f32 %v1296_v10, %v159_v15 }
  0xf3   :  { %v1385_v17 = vpop.f32.mrf.mxu0 }
  0xf4   :  { %v1302_v18 = vmul.f32 -1.442695, %v160_v16  ;;  %v1511_v17 = vld [vmem:[%s1911_s15 + $0x8] sm:$0xff]  }
  0xf5   :  { %v417_v59 = vpop.f32.mrf.mxu0 }
  0xf6   :  { %1515 = vpow2.f32 %v1302_v18  ;;  %vm423_vm8 = vcmp.eq.f32.partialorder %v417_v59, inf  ;;  %v426_v62 = vand.u32 2147483648, %v417_v59  ;;  %vm425_vm9 = vcmp.eq.f32.partialorder %v417_v59, 0.0  ;;  %v1512_v18 = vld [vmem:[%s1911_s15] sm:$0xff]  }
  0xf7   :  { %v1407_v60 = vpop.f32.mrf.mxu0 }
  0xff   :  { %v1514_v19 = vpop.eup %1513 }
 0x100   :  { %v169_v20 = vadd.f32 1.0, %v1514_v19 }
 0x102   :  { %1517 = vrcp.f32 %v169_v20 }
 0x103   :  { %v1516_v21 = vpop.eup %1515 }
 0x104   :  { %v170_v22 = vadd.f32 1.0, %v1516_v21  ;;  %v1316_v21 = vld [vmem:[%s1910_s14] ss:$0 sm:$0xff] }
 0x106   :  { %1519 = vrcp.f32 %v170_v22 }
 0x10f   :  { %v1518_v23 = vpop.eup %1517 }
 0x110   :  { %v175_v25 = vmul.f32 %v1518_v23, %v157_v12 }
 0x113   :  { %v1520_v24 = vpop.eup %1519 }
 0x114   :  { %v176_v26 = vmul.f32 %v1520_v24, %v160_v16 }
 0x116   :  { %v177_v27 = vpack.c.bf16 %v176_v26, %v175_v25 }
 0x118   :  { %1391 = vmatmul.mubr.msk.bf16.vlgmr.msra.gmra.mxu1 %vm201_vm3, %v177_v27 }
 0x119   :  { %1398 = vmatprep.mubr.msk.f32.mxu1 %vm1610_vm0, %v1609_v0 }
 0x1d8   :  { %v239_v33 = vpop.f32.mrf.mxu1 }
 0x1d9   :  { %v240_v34 = vadd.f32 %v1303_v32, %v239_v33 }
 0x1da   :  { %v1392_v35 = vpop.f32.mrf.mxu1 }
 0x1db   :  { %v1307_v36 = vmul.f32 -1.442695, %v240_v34 }
 0x1dc   :  { %v242_v37 = vpop.f32.mrf.mxu1 }
 0x1dd   :  { %1521 = vpow2.f32 %v1307_v36  ;;  %v243_v38 = vadd.f32 %v1303_v32, %v242_v37 }
 0x1de   :  { %v1393_v39 = vpop.f32.mrf.mxu1 }
 0x1df   :  { %v1308_v40 = vmul.f32 -1.442695, %v243_v38 }
 0x1e1   :  { %1523 = vpow2.f32 %v1308_v40 }
 0x1ea   :  { %v1522_v41 = vpop.eup %1521 }
 0x1eb   :  { %v252_v42 = vadd.f32 1.0, %v1522_v41  ;;  %v672_v41 = vld [vmem:[%s1901_s5 + $0x8] sm:$0xff] }
 0x1ed   :  { %1525 = vrcp.f32 %v252_v42  ;;  %v671_v42 = vld [vmem:[%s1901_s5] sm:$0xff] }
 0x1ee   :  { %v1524_v43 = vpop.eup %1523 }
 0x1ef   :  { %v253_v44 = vadd.f32 1.0, %v1524_v43  ;;  %v674_v43 = vld [vmem:[#allocation5 + $0x8] sm:$0xff] }
 0x1f1   :  { %1527 = vrcp.f32 %v253_v44  ;;  %v673_v44 = vld [vmem:[#allocation5] sm:$0xff] }
 0x1f2   :  { %1529 = vrsqrt.f32 %v417_v59 }
 0x1fa   :  { %v1526_v48 = vpop.eup %1525 }
 0x1fb   :  { %v258_v52 = vmul.f32 %v1526_v48, %v240_v34  ;;  %v1318_v34 = vld [vmem:[%s1912_s16] ss:$0 sm:$0xff]  ;;  %v828_v48 = vld [vmem:[#allocation5 + $0x10] sm:$0xff] }
 0x1fe   :  { %v1528_v49 = vpop.eup %1527 }
 0x1ff   :  { %v259_v50 = vmul.f32 %v1528_v49, %v243_v38  ;;  %v1530_v61 = vpop.eup %1529  ;;  %v978_v49 = vld [vmem:[%s1901_s5 + $0x28] sm:$0xff] }
 0x200   :  { %v422_v63 = vmul.f32 %v1530_v61, %v417_v59 }
 0x201   :  { %1395 = vmatpush3.msra.mxu1 %v259_v50  ;;  %v977_v50 = vld [vmem:[%s1901_s5 + $0x20] sm:$0xff] }
 0x202   :  { %1396 = vmatprep.subr.mxu1 %v1609_v0  ;;  %v424_v1 = vsel %vm423_vm8, %v417_v59, %v422_v63  ;;  %v1612_v63 = vmov 0  }
 0x203   :  { %1397 = vmatpush3.msra.mxu1 %v258_v52  ;;  %v427_v2 = vsel %vm425_vm9, %v426_v62, %v424_v1  ;;  %v979_v52 = vld [vmem:[#allocation5 + $0x20] sm:$0xff]  ;;  %v1611_v62 = vmov 2   ;;  %1501 = vset.pattern.permute.xlu1 %v1612_v63 }
 0x204   :  { %1399 = vmatmul.mubr.msk.f32.vlgmr.msra.gmra.mxu1 %vm270_vm4, %v1310_v53  ;;  %1408 = vmatprep.subr.bf16.mxu1 %v1609_v0  ;;  %v529_v3 = vpack.c.bf16 %v427_v2, %v427_v2  ;;  %v1129_v53 = vld [vmem:[%s1901_s5 + $0x38] sm:$0xff]  ;;  %s1615_s5 = smov [#allocation7]  }
 0x205   :  { %1409 = vmatpush3.bf16.msra.mxu1 %v439_v55  ;;  %1410 = vmatprep.mubr.msk.bf16.mxu1 %vm1610_vm0, %v1609_v0  ;;  %v1131_v55 = vld [vmem:[#allocation5 + $0x38] sm:$0xff]  ;;  %s1286_s28 = sshll.u32 %s1615_s5, 4  ;;  %s1287_s28 = int_to_ptr.vmem [resolvable:$true] %s1286_s28 }
 0x206   :  { %1420 = vmatprep.subr.bf16.mxu1 %v1609_v0  ;;  %1503 = vset.pattern.permute.xlu0 %v1611_v62  ;;  %s1579_s29 = scalar_lea.vmem %s1287_s28, 128  ;;  %p1584_p11 = scmp.lt.s32.totalorder %s1287_s28, %s1287_s28 }
 0x207   :  { %p1580_p10 = scmp.ne.s32.totalorder %s1287_s28, %s1579_s29  ;;  %p1585_p12 = scmp.lt.s32.totalorder %s1579_s29, %s1579_s29 }
 0x208   :  { %1411 = vmatmul.mubr.msk.bf16.vlgmr.msra.gmra.mxu1 %vm433_vm7, %v431_v57 }
 0x209   :  { %1421 = vmatpush3.bf16.msra.mxu1 %v535_v58  ;;  %1422 = vmatprep.mubr.msk.bf16.mxu1 %vm1610_vm0, %v1609_v0  ;;  %p1586_p13 = por %p1585_p12, %p1584_p11 }
 0x20a   :  { %1434 = vmatprep.subr.mxu1 %v1609_v0 }
 0x20b   :  { %p1587_p0 = pnand %p1586_p13, %p1580_p10 }
 0x210   :  { %1423 = vmatmul.mubr.msk.bf16.vlgmr.msra.gmra.mxu1 %vm433_vm7, %v529_v3 }
 0x211   :  { %1438 = vmatprep.mubr.msk.f32.mxu1 %vm1610_vm0, %v1609_v0  ;;  %1435 = vmatpush3.msra.mxu1 %v672_v41 }
 0x212   :  { %1436 = vmatprep.subr.mxu1 %v1609_v0 }
 0x213   :  { %1437 = vmatpush3.msra.mxu1 %v671_v42 }
 0x214   :  { %1448 = vmatprep.subr.mxu1 %v1609_v0 }
 0x218   :  { %1439 = vmatmul.mubr.msk.f32.vlgmr.msra.gmra.mxu1 %vm270_vm4, %v1758_v29 }
 0x219   :  { %1449 = vmatpush3.msra.mxu1 %v827_v45  ;;  %1452 = vmatprep.mubr.msk.f32.mxu1 %vm1610_vm0, %v1609_v0 }
 0x21a   :  { %1450 = vmatprep.subr.mxu1 %v1609_v0 }
 0x21b   :  { %1451 = vmatpush3.msra.mxu1 %v826_v46 }
 0x21c   :  { %1453 = vmatmul.mubr.msk.f32.vlgmr.msra.gmra.mxu1 %vm270_vm4, %v1758_v29  ;;  %1462 = vmatprep.subr.mxu1 %v1609_v0 }
 0x21d   :  { %1463 = vmatpush3.msra.mxu1 %v978_v49  ;;  %1466 = vmatprep.mubr.msk.f32.mxu1 %vm1610_vm0, %v1609_v0 }
 0x21e   :  { %1464 = vmatprep.subr.mxu1 %v1609_v0 }
 0x21f   :  { %1465 = vmatpush3.msra.mxu1 %v977_v50 }
 0x220   :  { %1467 = vmatmul.mubr.msk.f32.vlgmr.msra.gmra.mxu1 %vm270_vm4, %v1758_v29  ;;  %1476 = vmatprep.subr.mxu1 %v1609_v0 }
 0x221   :  { %1477 = vmatpush3.msra.mxu1 %v1129_v53  ;;  %1480 = vmatprep.mubr.msk.f32.mxu1 %vm1610_vm0, %v1609_v0 }
 0x222   :  { %1478 = vmatprep.subr.mxu1 %v1609_v0 }
 0x223   :  { %1479 = vmatpush3.msra.mxu1 %v1128_v54 }
 0x224   :  { %1481 = vmatmul.mubr.msk.f32.vlgmr.msra.gmra.mxu1 %vm270_vm4, %v1758_v29 }
 0x2c4   :  { %v340_v6 = vpop.f32.mrf.mxu1 }
 0x2c5   :  { %v428_v7 = vpack.c.bf16 %v340_v6, %v340_v6 }
 0x2c6   :  { %v1400_v8 = vpop.f32.mrf.mxu1 }
 0x2c7   :  { %1417 = vmatmul.mubr.msk.bf16.vlgmr.msra.gmra.mxu0 %vm481_vm11, %v428_v7 }
 0x2c8   :  { %v475_v9 = vpop.f32.mrf.mxu1  ;;  %1430 = vmatprep.mubr.msk.bf16.mxu0 %vm1610_vm0, %v1609_v0  ;;  %1427 = vmatpush3.bf16.msra.mxu0 %v1511_v17 }
 0x2c9   :  { %1428 = vmatprep.subr.bf16.mxu0 %v1609_v0 }
 0x2ca   :  { %v1412_v10 = vpop.f32.mrf.mxu1 }
 0x2cc   :  { %v478_v11 = vpop.f32.mrf.mxu1  ;;  %1429 = vmatpush3.bf16.msra.mxu0 %v1512_v18 }
 0x2cd   :  { %1441 = vmatprep.subr.mxu0 %v1609_v0 }
 0x2ce   :  { %v1413_v12 = vpop.f32.mrf.mxu1 }
 0x2d0   :  { %v571_v13 = vpop.f32.mrf.mxu1 }
 0x2d2   :  { %v1424_v14 = vpop.f32.mrf.mxu1 }
 0x2d4   :  { %v574_v15 = vpop.f32.mrf.mxu1 }
 0x2d5   :  { %v1613_v15 = vmov 1  }
 0x2d6   :  { %v1425_v16 = vpop.f32.mrf.mxu1 }
 0x2d7   :  { %v1614_v16 = vmov 3  }
 0x2d8   :  { %v744_v1 = vpop.f32.mrf.mxu1 }
 0x387   :  { %v523_v19 = vpop.f32.mrf.mxu0 }
 0x388   :  { %v524_v20 = vadd.f32 %v523_v19, %v475_v9 }
 0x389   :  { %v1418_v22 = vpop.f32.mrf.mxu0 }
 0x38a   :  { %v577_v23 = vadd.f32 %v571_v13, %v524_v20 }
 0x38b   :  { %v526_v24 = vpop.f32.mrf.mxu0 }
 0x38c   :  { %v585_v25 = vadd.f32 %v1316_v21, %v577_v23 }
 0x38d   :  { %v1419_v26 = vpop.f32.mrf.mxu0 }
 0x38e   :  { %v1317_v27 = vmul.f32 -1.442695, %v585_v25 }
 0x390   :  { %1531 = vpow2.f32 %v1317_v27 }
 0x39d   :  { %v1532_v28 = vpop.eup %1531 }
 0x39e   :  { %v589_v30 = vadd.f32 1.0, %v1532_v28 }
 0x3a0   :  { %1533 = vrcp.f32 %v589_v30 }
 0x3ad   :  { %v1534_v31 = vpop.eup %1533 }
 0x3ae   :  { %v592_v32 = vmul.f32 %v1534_v31, %v585_v25 }
 0x3b0   :  { %v593_v33 = vpack.c.bf16 %v592_v32, %v592_v32 }
 0x3b2   :  { %1431 = vmatmul.mubr.msk.bf16.vlgmr.msra.gmra.mxu0 %vm201_vm3, %v593_v33 }
 0x3b3   :  { %1445 = vmatprep.mubr.msk.f32.mxu0 %vm1610_vm0, %v1609_v0  ;;  %1442 = vmatpush3.msra.mxu0 %v674_v43 }
 0x3b4   :  { %1443 = vmatprep.subr.mxu0 %v1609_v0 }
 0x3b5   :  { %1444 = vmatpush3.msra.mxu0 %v673_v44 }
 0x3b6   :  { %1455 = vmatprep.subr.mxu0 %v1609_v0 }
 0x3ba   :  { %1446 = vmatmul.mubr.msk.f32.vlgmr.msra.gmra.mxu0 %vm270_vm4, %v1758_v29 }
 0x3bb   :  { %1456 = vmatpush3.msra.mxu0 %v829_v47  ;;  %1459 = vmatprep.mubr.msk.f32.mxu0 %vm1610_vm0, %v1609_v0 }
 0x3bc   :  { %1457 = vmatprep.subr.mxu0 %v1609_v0 }
 0x3bd   :  { %1458 = vmatpush3.msra.mxu0 %v828_v48 }
 0x3be   :  { %1460 = vmatmul.mubr.msk.f32.vlgmr.msra.gmra.mxu0 %vm270_vm4, %v1758_v29  ;;  %1469 = vmatprep.subr.mxu0 %v1609_v0 }
 0x3bf   :  { %1470 = vmatpush3.msra.mxu0 %v980_v51  ;;  %1473 = vmatprep.mubr.msk.f32.mxu0 %vm1610_vm0, %v1609_v0 }
 0x3c0   :  { %1471 = vmatprep.subr.mxu0 %v1609_v0 }
 0x3c1   :  { %1472 = vmatpush3.msra.mxu0 %v979_v52 }
 0x3c2   :  { %1474 = vmatmul.mubr.msk.f32.vlgmr.msra.gmra.mxu0 %vm270_vm4, %v1758_v29  ;;  %1483 = vmatprep.subr.mxu0 %v1609_v0 }
 0x3c3   :  { %1484 = vmatpush3.msra.mxu0 %v1131_v55  ;;  %1487 = vmatprep.mubr.msk.f32.mxu0 %vm1610_vm0, %v1609_v0 }
 0x3c4   :  { %1485 = vmatprep.subr.mxu0 %v1609_v0  ;;  %v1440_v0 = vpop.f32.mrf.mxu1 }
 0x3c5   :  { %1486 = vmatpush3.msra.mxu0 %v1130_v56 }
 0x3c6   :  { %1488 = vmatmul.mubr.msk.f32.vlgmr.msra.gmra.mxu0 %vm270_vm4, %v1758_v29  ;;  %v896_v4 = vpop.f32.mrf.mxu1 }
 0x3c8   :  { %v1454_v5 = vpop.f32.mrf.mxu1 }
 0x3ca   :  { %v1047_v7 = vpop.f32.mrf.mxu1 }
 0x3cc   :  { %v1468_v8 = vpop.f32.mrf.mxu1 }
 0x3ce   :  { %v1198_v14 = vpop.f32.mrf.mxu1 }
 0x3d0   :  { %v1482_v18 = vpop.f32.mrf.mxu1 }
 0x472   :  { %v654_v35 = vpop.f32.mrf.mxu0 }
 0x473   :  { %v1821_v36 = vadd.f32 %v1318_v34, %v654_v35 }
 0x474   :  { %v1432_v37 = vpop.f32.mrf.mxu0 }
 0x475   :  { %v660_v38 = vsel %vm433_vm7, %v1821_v36, -inf }
 0x476   :  { %661 = vmax.xlane.f32.xlu0 %v660_v38  ;;  %v657_v39 = vpop.f32.mrf.mxu0 }
 0x478   :  { %v1433_v40 = vpop.f32.mrf.mxu0 }
 0x47a   :  { %v814_v2 = vpop.f32.mrf.mxu0 }
 0x47c   :  { %v1447_v3 = vpop.f32.mrf.mxu0 }
 0x47e   :  { %v966_v29 = vpop.f32.mrf.mxu0 }
 0x480   :  { %v1461_v6 = vpop.f32.mrf.mxu0 }
 0x482   :  { %v1117_v11 = vpop.f32.mrf.mxu0 }
 0x484   :  { %v1475_v13 = vpop.f32.mrf.mxu0 }
 0x486   :  { %v1268_v17 = vpop.f32.mrf.mxu0 }
 0x488   :  { %v1489_v19 = vpop.f32.mrf.mxu0 }
 0x4ff   :  { %v662_v57 = vpop.xlane.xlu0 %661 }
 0x500   :  { %v663_v58 = vsub.f32 %v1821_v36, %v662_v57 }
 0x502   :  { %v664_v59 = vmul.f32 1.442695, %v663_v58 }
 0x504   :  { %1535 = vpow2.f32 %v664_v59 }
 0x511   :  { %v1536_v60 = vpop.eup %1535 }
 0x512   :  { %v666_v61 = vsel %vm433_vm7, %v1536_v60, 0.0 }
 0x513   :  { %667 = vadd.xlane.f32.xlu0 %v666_v61 }
 0x59c   :  { %v668_v9 = vpop.xlane.xlu0 %667 }
 0x59d   :  { %1537 = vrcp.f32 %v668_v9 }
 0x5aa   :  { %v1538_v10 = vpop.eup %1537 }
 0x5ab   :  { %v670_v12 = vmul.f32 %v1538_v10, %v1536_v60 }
 0x5ad   :  { %1122 = vperm.xlu0 %1503, %v670_v12   ;;  %820 = vperm.xlu1 %1501, %v670_v12  }
 0x5b1   :  { %1502 = vset.pattern.permute.xlu1 %v1613_v15  ;;  %1505 = vset.pattern.permute.xlu0 %v1614_v16 }
 0x5b2   :  { %971 = vperm.xlu1 %1502, %v670_v12  }
 0x5b6   :  { %1504 = vset.pattern.permute.xlu1 %v1614_v16 }
 0x5b7   :  { %1273 = vperm.xlu1 %1504, %v670_v12  }
 0x628   :  { %v821_v20 = vpop.permute.xlu1 %820  ;;  %v1123_v21 = vpop.permute.xlu0 %1122 }
 0x629   :  { %v823_v22 = vmul.f32 %v821_v20, %v744_v1  ;;  %v1125_v24 = vmul.f32 %v1123_v21, %v1047_v7 }
 0x62b   :  { %v824_v26 = vmul.f32 %v823_v22, %v814_v2  ;;  %v1126_v28 = vmul.f32 %v1125_v24, %v1117_v11 }
 0x62d   :  { %v972_v23 = vpop.permute.xlu1 %971 }
 0x62e   :  { %v974_v25 = vmul.f32 %v972_v23, %v896_v4 }
 0x630   :  { %v975_v27 = vmul.f32 %v974_v25, %v966_v29 }
 0x632   :  { %v976_v30 = vadd.f32 %v975_v27, %v824_v26  ;;  %v1274_v31 = vpop.permute.xlu1 %1273 }
 0x633   :  { %v1276_v32 = vmul.f32 %v1274_v31, %v1198_v14 }
 0x634   :  { %v1127_v33 = vadd.f32 %v1126_v28, %v976_v30 }
 0x635   :  { %v1277_v34 = vmul.f32 %v1276_v32, %v1268_v17 }
 0x637   :  { %v1278_v35 = vadd.f32 %v1277_v34, %v1127_v33 }
 0x639   :  { %1279 = vst [vmem:[#allocation7] sm:$0xff] %v1278_v35 }
 0x63a   :  { %1590 = shalt.err (!%p1587_p0)
}
 0x63b   :  { %1289 = dma.vmem_to_hbm [thread:$0]  %s1287_s28, 128, %s1913_s17, [#allocation4]  }
 0x63c   :  { %1603 = dma.done.wait [#allocation4], 128  }
 0x63d   :  { %1604 = vsyncadd [#allocation4], 4294967168 }
 0x63e   :  { %1293 = vsyncpa [#allocation3], 1 }
 0x63f   :  { %1294 = vsyncpa [#allocation6], 1 }
 0x640   :  { %1295 = vsyncpa [#allocation4], 1 }

</bundles_post_ra>
